<compile_context>
chip_gen: v6e
topology: v6e:2x2x1
jax: 0.10.0
libtpu: 0.0.40
codegen_flags: <defaults>
</compile_context>

<pallas_src>
import jax
import jax.numpy as jnp
from jax.experimental import pallas as pl
from jax.experimental.pallas import tpu as pltpu

N_HIDDEN = 128
N_PAD = 128  # lane-dense padded output width (true n_actions = 2)


def qnet_kernel(x_ref, slab_ref, w2_ref, w3_ref, o_ref):
    x = x_ref[...]            # (TB, 4) f32
    slab = slab_ref[...]      # (8, 128): rows 0-3 = w1, 4 = b1, 5 = b2, 6 = b3(pad), 7 = zeros

    # fc1 + relu on the VPU: K=4 would badly underfill the MXU, so do 4 broadcast FMAs.
    h1 = (x[:, 0:1] * slab[0:1, :]
          + x[:, 1:2] * slab[1:2, :]
          + x[:, 2:3] * slab[2:3, :]
          + x[:, 3:4] * slab[3:4, :]
          + slab[4:5, :])
    h1 = jnp.maximum(h1, 0.0)

    # fc2 + relu (MXU, f32 accumulation)
    h2 = jnp.dot(h1, w2_ref[...], preferred_element_type=jnp.float32) + slab[5:6, :]
    h2 = jnp.maximum(h2, 0.0)

    # fc3 (no activation), lane-dense padded to 128 output columns
    out = jnp.dot(h2, w3_ref[...], preferred_element_type=jnp.float32) + slab[6:7, :]
    o_ref[...] = out.astype(o_ref.dtype)


def qnet_forward(x, params, tb=128):
    """x: (B, 4) f32 observations. Returns (B, 2) Q-values."""
    w1, b1, w2, b2, w3, b3 = params
    B = x.shape[0]
    n_out = w3.shape[1]  # 2

    # Lane-dense fc3: zero-pad to 128 output lanes.
    w3p = jnp.zeros((N_HIDDEN, N_PAD), jnp.float32).at[:, :n_out].set(w3)
    b3p = jnp.zeros((N_PAD,), jnp.float32).at[:n_out].set(b3[0])

    # Pack w1 + all biases into one (8, 128) slab -> a single small DMA.
    slab = jnp.zeros((8, N_PAD), jnp.float32)
    slab = slab.at[0:4, :].set(w1)
    slab = slab.at[4, :].set(b1[0])
    slab = slab.at[5, :].set(b2[0])
    slab = slab.at[6, :].set(b3p)

    # Pad batch to a multiple of the batch tile.
    num_blocks = pl.cdiv(B, tb)
    Bp = num_blocks * tb
    if Bp != B:
        x = jnp.pad(x, ((0, Bp - B), (0, 0)))

    out = pl.pallas_call(
        qnet_kernel,
        out_shape=jax.ShapeDtypeStruct((Bp, N_PAD), jnp.float32),
        grid=(num_blocks,),
        in_specs=[
            pl.BlockSpec((tb, 4), lambda i: (i, 0)),          # activations: tiled over batch
            pl.BlockSpec((8, N_PAD), lambda i: (0, 0)),       # packed w1 + biases: resident
            pl.BlockSpec((N_HIDDEN, N_HIDDEN), lambda i: (0, 0)),  # w2: resident
            pl.BlockSpec((N_HIDDEN, N_PAD), lambda i: (0, 0)),     # w3 (padded): resident
        ],
        out_specs=pl.BlockSpec((tb, N_PAD), lambda i: (i, 0)),
        compiler_params=pltpu.CompilerParams(
            dimension_semantics=("parallel",),  # shard batch axis across TCs on v7x
        ),
    )(x, slab, w2, w3p)

    return out[:B, :n_out]


def init_params(key):
    """Deterministic init mirroring PyTorch nn.Linear default (uniform +/- 1/sqrt(fan_in))."""
    def linear(key, fan_in, fan_out):
        kw, kb = jax.random.split(key)
        bound = 1.0 / jnp.sqrt(jnp.float32(fan_in))
        # stored as (in, out) so the kernel does x @ w
        w = jax.random.uniform(kw, (fan_in, fan_out), jnp.float32, -bound, bound)
        b = jax.random.uniform(kb, (1, fan_out), jnp.float32, -bound, bound)
        return w, b

    k1, k2, k3 = jax.random.split(key, 3)
    w1, b1 = linear(k1, 4, N_HIDDEN)
    w2, b2 = linear(k2, N_HIDDEN, N_HIDDEN)
    w3, b3 = linear(k3, N_HIDDEN, 2)
    return (w1, b1, w2, b2, w3, b3)


def qnet_reference(x, params):
    w1, b1, w2, b2, w3, b3 = params
    h1 = jnp.maximum(x @ w1 + b1, 0.0)
    h2 = jnp.maximum(h1 @ w2 + b2, 0.0)
    return h2 @ w3 + b3


if __name__ == "__main__":
    key = jax.random.PRNGKey(0)
    kp, kx1, kx2 = jax.random.split(key, 3)
    params = init_params(kp)

    # Acting path: a handful of CartPole observations (obs dim = 4); padded internally.
    x_small = jax.random.normal(kx1, (8, 4), dtype=jnp.float32)
    out_small = jax.block_until_ready(qnet_forward(x_small, params))
    ref_small = qnet_reference(x_small, params)
    assert out_small.shape == (8, 2), out_small.shape
    assert jnp.allclose(out_small, ref_small, atol=1e-5, rtol=1e-5), "mismatch (B=8)"

    # Training path: replay-buffer minibatch; exercises the batch grid (2 tiles of 128).
    x_batch = jax.random.normal(kx2, (256, 4), dtype=jnp.float32)
    out_batch = jax.block_until_ready(qnet_forward(x_batch, params))
    ref_batch = qnet_reference(x_batch, params)
    assert out_batch.shape == (256, 2), out_batch.shape
    assert jnp.allclose(out_batch, ref_batch, atol=1e-5, rtol=1e-5), "mismatch (B=256)"

    print("KERNEL_OK")
</pallas_src>

<mosaic_0001>
module attributes {stable_mosaic.version = 11 : i64} {
  func.func @qnet_kernel(%arg0: i32, %arg1: memref<128x4xf32, #tpu.memory_space<vmem>>, %arg2: memref<8x128xf32, #tpu.memory_space<vmem>>, %arg3: memref<128x128xf32, #tpu.memory_space<vmem>>, %arg4: memref<128x128xf32, #tpu.memory_space<vmem>>, %arg5: memref<128x128xf32, #tpu.memory_space<vmem>>) attributes {dimension_semantics = [#tpu.dimension_semantics<parallel>], iteration_bounds = array<i64: 1>, scalar_prefetch = 0 : i64, scratch_operands = 0 : i64, tpu.core_type = #tpu.core_type<tc>, window_params = [{transform_indices = @transform_0, window_bounds = array<i64: 128, 4>}, {pipeline_mode = #tpu.pipeline_mode<synchronous>, transform_indices = @transform_1, window_bounds = array<i64: 8, 128>}, {pipeline_mode = #tpu.pipeline_mode<synchronous>, transform_indices = @transform_2, window_bounds = array<i64: 128, 128>}, {pipeline_mode = #tpu.pipeline_mode<synchronous>, transform_indices = @transform_3, window_bounds = array<i64: 128, 128>}, {transform_indices = @transform_4, window_bounds = array<i64: 128, 128>}]} {
    %c0 = arith.constant 0 : index
    %c0_0 = arith.constant 0 : index
    %0 = vector.load %arg1[%c0, %c0_0] : memref<128x4xf32, #tpu.memory_space<vmem>>, vector<128x4xf32>
    %c0_1 = arith.constant 0 : index
    %c0_2 = arith.constant 0 : index
    %1 = vector.load %arg2[%c0_1, %c0_2] : memref<8x128xf32, #tpu.memory_space<vmem>>, vector<8x128xf32>
    %2 = vector.extract_strided_slice %0 {offsets = [0, 0], sizes = [128, 1], strides = [1, 1]} : vector<128x4xf32> to vector<128x1xf32>
    %3 = vector.extract_strided_slice %1 {offsets = [0, 0], sizes = [1, 128], strides = [1, 1]} : vector<8x128xf32> to vector<1x128xf32>
    %4 = vector.broadcast %2 : vector<128x1xf32> to vector<128x128xf32>
    %5 = vector.broadcast %3 : vector<1x128xf32> to vector<128x128xf32>
    %6 = arith.mulf %4, %5 : vector<128x128xf32>
    %7 = vector.extract_strided_slice %0 {offsets = [0, 1], sizes = [128, 1], strides = [1, 1]} : vector<128x4xf32> to vector<128x1xf32>
    %8 = vector.extract_strided_slice %1 {offsets = [1, 0], sizes = [1, 128], strides = [1, 1]} : vector<8x128xf32> to vector<1x128xf32>
    %9 = vector.broadcast %7 : vector<128x1xf32> to vector<128x128xf32>
    %10 = vector.broadcast %8 : vector<1x128xf32> to vector<128x128xf32>
    %11 = arith.mulf %9, %10 : vector<128x128xf32>
    %12 = arith.addf %6, %11 : vector<128x128xf32>
    %13 = vector.extract_strided_slice %0 {offsets = [0, 2], sizes = [128, 1], strides = [1, 1]} : vector<128x4xf32> to vector<128x1xf32>
    %14 = vector.extract_strided_slice %1 {offsets = [2, 0], sizes = [1, 128], strides = [1, 1]} : vector<8x128xf32> to vector<1x128xf32>
    %15 = vector.broadcast %13 : vector<128x1xf32> to vector<128x128xf32>
    %16 = vector.broadcast %14 : vector<1x128xf32> to vector<128x128xf32>
    %17 = arith.mulf %15, %16 : vector<128x128xf32>
    %18 = arith.addf %12, %17 : vector<128x128xf32>
    %19 = vector.extract_strided_slice %0 {offsets = [0, 3], sizes = [128, 1], strides = [1, 1]} : vector<128x4xf32> to vector<128x1xf32>
    %20 = vector.extract_strided_slice %1 {offsets = [3, 0], sizes = [1, 128], strides = [1, 1]} : vector<8x128xf32> to vector<1x128xf32>
    %21 = vector.broadcast %19 : vector<128x1xf32> to vector<128x128xf32>
    %22 = vector.broadcast %20 : vector<1x128xf32> to vector<128x128xf32>
    %23 = arith.mulf %21, %22 : vector<128x128xf32>
    %24 = arith.addf %18, %23 : vector<128x128xf32>
    %25 = vector.extract_strided_slice %1 {offsets = [4, 0], sizes = [1, 128], strides = [1, 1]} : vector<8x128xf32> to vector<1x128xf32>
    %26 = vector.broadcast %25 : vector<1x128xf32> to vector<128x128xf32>
    %27 = arith.addf %24, %26 : vector<128x128xf32>
    %cst = arith.constant 0.000000e+00 : f32
    %28 = vector.broadcast %cst : f32 to vector<128x128xf32>
    %29 = arith.maximumf %27, %28 : vector<128x128xf32>
    %c0_3 = arith.constant 0 : index
    %c0_4 = arith.constant 0 : index
    %30 = vector.load %arg3[%c0_3, %c0_4] : memref<128x128xf32, #tpu.memory_space<vmem>>, vector<128x128xf32>
    %cst_5 = arith.constant dense<0.000000e+00> : vector<128x128xf32>
    %31 = tpu.matmul %29, %30, %cst_5 {dimension_numbers = #tpu.dot_dimension_numbers<[1], [0], [0], [1], [0, 0, 1, 1], [], []>} : vector<128x128xf32>, vector<128x128xf32>, vector<128x128xf32> -> vector<128x128xf32>
    %32 = vector.extract_strided_slice %1 {offsets = [5, 0], sizes = [1, 128], strides = [1, 1]} : vector<8x128xf32> to vector<1x128xf32>
    %33 = vector.broadcast %32 : vector<1x128xf32> to vector<128x128xf32>
    %34 = arith.addf %31, %33 : vector<128x128xf32>
    %cst_6 = arith.constant 0.000000e+00 : f32
    %35 = vector.broadcast %cst_6 : f32 to vector<128x128xf32>
    %36 = arith.maximumf %34, %35 : vector<128x128xf32>
    %c0_7 = arith.constant 0 : index
    %c0_8 = arith.constant 0 : index
    %37 = vector.load %arg4[%c0_7, %c0_8] : memref<128x128xf32, #tpu.memory_space<vmem>>, vector<128x128xf32>
    %cst_9 = arith.constant dense<0.000000e+00> : vector<128x128xf32>
    %38 = tpu.matmul %36, %37, %cst_9 {dimension_numbers = #tpu.dot_dimension_numbers<[1], [0], [0], [1], [0, 0, 1, 1], [], []>} : vector<128x128xf32>, vector<128x128xf32>, vector<128x128xf32> -> vector<128x128xf32>
    %39 = vector.extract_strided_slice %1 {offsets = [6, 0], sizes = [1, 128], strides = [1, 1]} : vector<8x128xf32> to vector<1x128xf32>
    %40 = vector.broadcast %39 : vector<1x128xf32> to vector<128x128xf32>
    %41 = arith.addf %38, %40 : vector<128x128xf32>
    %c0_10 = arith.constant 0 : index
    %c0_11 = arith.constant 0 : index
    %42 = vector.load %arg5[%c0_10, %c0_11] : memref<128x128xf32, #tpu.memory_space<vmem>>, vector<128x128xf32>
    tpu.vector_store %arg5[%c0_10, %c0_11], %41 {strides = array<i32>} : memref<128x128xf32, #tpu.memory_space<vmem>>, vector<128x128xf32>,
    return
  }
  func.func @transform_0(%arg0: i32) -> (i32, i32) {
    %c0_i32 = arith.constant 0 : i32
    %c0_i32_0 = arith.constant 0 : i32
    return %arg0, %c0_i32 : i32, i32
  }
  func.func @transform_1(%arg0: i32) -> (i32, i32) {
    %c0_i32 = arith.constant 0 : i32
    %c0_i32_0 = arith.constant 0 : i32
    %c0_i32_1 = arith.constant 0 : i32
    return %c0_i32, %c0_i32_0 : i32, i32
  }
  func.func @transform_2(%arg0: i32) -> (i32, i32) {
    %c0_i32 = arith.constant 0 : i32
    %c0_i32_0 = arith.constant 0 : i32
    %c0_i32_1 = arith.constant 0 : i32
    return %c0_i32, %c0_i32_0 : i32, i32
  }
  func.func @transform_3(%arg0: i32) -> (i32, i32) {
    %c0_i32 = arith.constant 0 : i32
    %c0_i32_0 = arith.constant 0 : i32
    %c0_i32_1 = arith.constant 0 : i32
    return %c0_i32, %c0_i32_0 : i32, i32
  }
  func.func @transform_4(%arg0: i32) -> (i32, i32) {
    %c0_i32 = arith.constant 0 : i32
    %c0_i32_0 = arith.constant 0 : i32
    return %arg0, %c0_i32 : i32, i32
  }
}

</mosaic_0001>

<bundles_post_ra>
// kernel: tpu_custom_call.1
= control target key start
LH: loop header
LB: loop body
LE: loop exit
PB: predicated region body
PF: predicated region fallthrough
CT: control target
= control target key end

     0   :  { %9 = vsyncpa [#allocation3], 0  ;;  %s1580_s0 = inlined_call_operand.vmem [shape: f32[128,4], index: 0, kind: input, shape index: {}]   ;;  %s1581_s1 = inlined_call_operand.hbm [shape: f32[8,128], index: 1, kind: input, shape index: {}]   ;;  %s1582_s2 = inlined_call_operand.vmem [shape: f32[128,128], index: 2, kind: input, shape index: {}]   ;;  %s1583_s3 = inlined_call_operand.hbm [shape: f32[128,128], index: 3, kind: input, shape index: {}]   ;;  %s1584_s4 = inlined_call_operand.hbm [shape: f32[128,128], index: 4, kind: output, shape index: {}]  }
   0x1   :  { %10 = vsyncpa [#allocation6], 0 }
   0x2   :  { %11 = vsyncpa [#allocation4], 0  ;;  %s1172_s15 = smov [#allocation2]   ;;  %s1173_s17 = smov [#allocation5]  }
   0x3   :  { %s20_s16 = sshll.u32 %s1172_s15, 4  ;;  %s31_s18 = sshll.u32 %s1173_s17, 4  ;;  %s21_s16 = int_to_ptr.vmem [resolvable:$true] %s20_s16  ;;  %s32_s18 = int_to_ptr.vmem [resolvable:$true] %s31_s18 }
   0x4   :  { %s1114_s19 = scalar_lea.vmem %s21_s16, 128  ;;  %p1119_p1 = scmp.lt.s32.totalorder %s21_s16, %s21_s16 }
   0x5   :  { %p1115_p0 = scmp.ne.s32.totalorder %s21_s16, %s1114_s19  ;;  %p1120_p2 = scmp.lt.s32.totalorder %s1114_s19, %s1114_s19 }
   0x7   :  { %p1121_p3 = por %p1120_p2, %p1119_p1 }
   0x9   :  { %p1122_p4 = pnand %p1121_p3, %p1115_p0 }
   0xb   :  { %1125 = shalt.err (!%p1122_p4)
}
   0xc   :  { %23 = dma.hbm_to_vmem [thread:$0]  %s1581_s1, 128, %s21_s16, [#allocation3]  }
   0xd   :  { %s1134_s22 = scalar_lea.vmem %s32_s18, 2048  ;;  %p1139_p6 = scmp.lt.s32.totalorder %s32_s18, %s32_s18 }
   0xe   :  { %p1135_p5 = scmp.ne.s32.totalorder %s32_s18, %s1134_s22  ;;  %p1140_p7 = scmp.lt.s32.totalorder %s1134_s22, %s1134_s22 }
  0x10   :  { %p1141_p8 = por %p1140_p7, %p1139_p6 }
  0x12   :  { %p1142_p9 = pnand %p1141_p8, %p1135_p5 }
  0x14   :  { %1145 = shalt.err (!%p1142_p9)
}
  0x15   :  { %s1174_s23 = smov 128   ;;  %s1175_s24 = smov 8  }
  0x16   :  { %37 = dma.hbm_to_vmem [thread:$0]  %s1583_s3, 2048, %s32_s18, [#allocation6], %s1174_s23, %s1174_s23, %s1175_s24  }
  0x17   :  { %1166 = dma.done.wait [#allocation3], 128  }
  0x18   :  { %1167 = vsyncadd [#allocation3], 4294967168 }
  0x19   :  { %1168 = dma.done.wait [#allocation6], 2048  }
  0x1a   :  { %1169 = vsyncadd [#allocation6], 4294965248  ;;  %v1176_v0 = vmov 0   ;;  %v1220_v1 = vld [vmem:[%s1580_s0 + $0x8] sm:$0xff]  ;;  %v44_v2 = vld [vmem:[%s1580_s0] sm:$0xff]  ;;  %v1177_v3 = vmov 1   ;;  %v141_v35 = vlaneseq }
  0x1b   :  { %1064 = vset.pattern.permute.xlu1 %v1176_v0  ;;  %1062 = vset.pattern.permute.xlu0 %v1176_v0  ;;  %v1178_v4 = vmov 2   ;;  %v1179_v5 = vmov 3   ;;  %v46_v6 = vld [vmem:[%s1580_s0 + $0x10] sm:$0xff]  ;;  %v1240_v7 = vld [vmem:[%s1580_s0 + $0x18] sm:$0xff]  ;;  %v48_v8 = vld [vmem:[%s1580_s0 + $0x20] sm:$0xff] }
  0x1c   :  { %68 = vperm.xlu1 %1064, %v1220_v1   ;;  %63 = vperm.xlu0 %1062, %v44_v2   ;;  %v1251_v9 = vld [vmem:[%s1580_s0 + $0x28] sm:$0xff]  ;;  %v1259_v10 = vld [vmem:[%s1580_s0 + $0x30] sm:$0xff]  ;;  %v1266_v11 = vld [vmem:[%s1580_s0 + $0x38] sm:$0xff]  ;;  %v1397_v36 = vshrl.u32 %v141_v35, 7 }
  0x1d   :  { %v1273_v12 = vld [vmem:[%s1580_s0 + $0x40] sm:$0xff]  ;;  %v512_v13 = vld [vmem:[%s1582_s2 + $0x78] sm:$0xff]  ;;  %v511_v14 = vld [vmem:[%s1582_s2 + $0x70] sm:$0xff] }
  0x1e   :  { %941 = vmatprep.subr.mxu0 %v512_v13  ;;  %v1285_v15 = vld [vmem:[%s1580_s0 + $0x48] sm:$0xff]  ;;  %v509_v17 = vld [vmem:[%s1582_s2 + $0x60] sm:$0xff]  ;;  %v1298_v18 = vld [vmem:[%s1580_s0 + $0x50] sm:$0xff]  ;;  %v143_v37 = vsub.s32 0, %v1397_v36  ;;  %v227_v41 = vsub.s32 1, %v1397_v36  ;;  %v327_v43 = vsub.s32 2, %v1397_v36 }
  0x1f   :  { %942 = vmatpush3.msra.mxu0 %v512_v13  ;;  %v510_v16 = vld [vmem:[%s1582_s2 + $0x68] sm:$0xff]  ;;  %v508_v19 = vld [vmem:[%s1582_s2 + $0x58] sm:$0xff]  ;;  %v507_v20 = vld [vmem:[%s1582_s2 + $0x50] sm:$0xff]  ;;  %v427_v44 = vsub.s32 3, %v1397_v36  ;;  %v463_v53 = vsub.s32 4, %v1397_v36 }
  0x20   :  { %1065 = vset.pattern.permute.xlu1 %v1177_v3  ;;  %1063 = vset.pattern.permute.xlu0 %v1177_v3  ;;  %v1312_v21 = vld [vmem:[%s1580_s0 + $0x58] sm:$0xff]  ;;  %v506_v22 = vld [vmem:[%s1582_s2 + $0x48] sm:$0xff]  ;;  %v505_v23 = vld [vmem:[%s1582_s2 + $0x40] sm:$0xff] }
  0x21   :  { %166 = vperm.xlu1 %1065, %v1220_v1   ;;  %162 = vperm.xlu0 %1063, %v44_v2   ;;  %v1326_v24 = vld [vmem:[%s1580_s0 + $0x60] sm:$0xff]  ;;  %v504_v25 = vld [vmem:[%s1582_s2 + $0x38] sm:$0xff]  ;;  %v503_v26 = vld [vmem:[%s1582_s2 + $0x30] sm:$0xff] }
  0x22   :  { %943 = vmatprep.subr.mxu0 %v511_v14  ;;  %v1339_v27 = vld [vmem:[%s1580_s0 + $0x68] sm:$0xff]  ;;  %v501_v29 = vld [vmem:[%s1582_s2 + $0x20] sm:$0xff]  ;;  %v500_v30 = vld [vmem:[%s1582_s2 + $0x18] sm:$0xff] }
  0x23   :  { %944 = vmatpush3.msra.mxu0 %v511_v14  ;;  %v502_v28 = vld [vmem:[%s1582_s2 + $0x28] sm:$0xff]  ;;  %v499_v31 = vld [vmem:[%s1582_s2 + $0x10] sm:$0xff]  ;;  %v497_v33 = vld [vmem:[%s1582_s2] sm:$0xff] }
  0x24   :  { %945 = vmatprep.subr.mxu0 %v510_v16  ;;  %v498_v32 = vld [vmem:[%s1582_s2 + $0x8] sm:$0xff]  ;;  %v1383_v34 = vld [vmem:[%s1580_s0 + $0x78] sm:$0xff]  ;;  %v1402_v38 = vld [vmem:[#allocation2] sm:$0xff] }
  0x25   :  { %1066 = vset.pattern.permute.xlu1 %v1178_v4  ;;  %1069 = vset.pattern.permute.xlu0 %v1179_v5  ;;  %v1410_v42 = vrot.slane %v1402_v38, %v143_v37  ;;  %v1415_v45 = vrot.slane %v1402_v38, %v227_v41  ;;  %v1424_v50 = vrot.slane %v1402_v38, %v327_v43 }
  0x26   :  { %262 = vperm.xlu1 %1066, %v44_v2   ;;  %362 = vperm.xlu0 %1069, %v44_v2   ;;  %v1427_v51 = vrot.slane %v1402_v38, %v427_v44  ;;  %v1435_v59 = vrot.slane %v1402_v38, %v463_v53 }
  0x27   :  { %946 = vmatpush3.msra.mxu0 %v510_v16 }
  0x28   :  { %947 = vmatprep.subr.mxu0 %v509_v17 }
  0x29   :  { %948 = vmatpush3.msra.mxu0 %v509_v17 }
  0x2a   :  { %1067 = vset.pattern.permute.xlu1 %v1176_v0  ;;  %366 = vperm.xlu0 %1069, %v1220_v1  }
  0x2b   :  { %73 = vperm.xlu1 %1067, %v46_v6   ;;  %949 = vmatprep.subr.mxu0 %v508_v19 }
  0x2c   :  { %950 = vmatpush3.msra.mxu0 %v508_v19 }
  0x2d   :  { %951 = vmatprep.subr.mxu0 %v507_v20 }
  0x2e   :  { %370 = vperm.xlu0 %1069, %v46_v6   ;;  %952 = vmatpush3.msra.mxu0 %v507_v20 }
  0x2f   :  { %1068 = vset.pattern.permute.xlu1 %v1177_v3  ;;  %953 = vmatprep.subr.mxu0 %v506_v22 }
  0x30   :  { %170 = vperm.xlu1 %1068, %v46_v6   ;;  %954 = vmatpush3.msra.mxu0 %v506_v22 }
  0x31   :  { %955 = vmatprep.subr.mxu0 %v505_v23 }
  0x32   :  { %374 = vperm.xlu0 %1069, %v1240_v7   ;;  %956 = vmatpush3.msra.mxu0 %v505_v23 }
  0x33   :  { %957 = vmatprep.subr.mxu0 %v504_v25 }
  0x34   :  { %1070 = vset.pattern.permute.xlu1 %v1176_v0  ;;  %958 = vmatpush3.msra.mxu0 %v504_v25 }
  0x35   :  { %78 = vperm.xlu1 %1070, %v1240_v7   ;;  %959 = vmatprep.subr.mxu0 %v503_v26 }
  0x36   :  { %378 = vperm.xlu0 %1069, %v48_v8   ;;  %960 = vmatpush3.msra.mxu0 %v503_v26 }
  0x37   :  { %961 = vmatprep.subr.mxu0 %v502_v28 }
  0x38   :  { %962 = vmatpush3.msra.mxu0 %v502_v28 }
  0x39   :  { %1071 = vset.pattern.permute.xlu1 %v1177_v3  ;;  %963 = vmatprep.subr.mxu0 %v501_v29 }
  0x3a   :  { %174 = vperm.xlu1 %1071, %v1240_v7   ;;  %382 = vperm.xlu0 %1069, %v1251_v9  }
  0x3b   :  { %964 = vmatpush3.msra.mxu0 %v501_v29 }
  0x3c   :  { %965 = vmatprep.subr.mxu0 %v500_v30 }
  0x3d   :  { %966 = vmatpush3.msra.mxu0 %v500_v30 }
  0x3e   :  { %1072 = vset.pattern.permute.xlu1 %v1178_v4  ;;  %386 = vperm.xlu0 %1069, %v1259_v10  }
  0x3f   :  { %270 = vperm.xlu1 %1072, %v46_v6   ;;  %967 = vmatprep.subr.mxu0 %v499_v31 }
  0x40   :  { %968 = vmatpush3.msra.mxu0 %v499_v31 }
  0x41   :  { %969 = vmatprep.subr.mxu0 %v498_v32 }
  0x42   :  { %390 = vperm.xlu0 %1069, %v1266_v11   ;;  %970 = vmatpush3.msra.mxu0 %v498_v32 }
  0x43   :  { %1073 = vset.pattern.permute.xlu1 %v1176_v0  ;;  %971 = vmatprep.subr.mxu0 %v497_v33 }
  0x44   :  { %83 = vperm.xlu1 %1073, %v48_v8   ;;  %972 = vmatpush3.msra.mxu0 %v497_v33 }
  0x46   :  { %394 = vperm.xlu0 %1069, %v1273_v12  }
  0x48   :  { %1074 = vset.pattern.permute.xlu1 %v1177_v3 }
  0x49   :  { %178 = vperm.xlu1 %1074, %v48_v8  }
  0x4a   :  { %398 = vperm.xlu0 %1069, %v1285_v15  }
  0x4d   :  { %1075 = vset.pattern.permute.xlu1 %v1176_v0 }
  0x4e   :  { %88 = vperm.xlu1 %1075, %v1251_v9   ;;  %402 = vperm.xlu0 %1069, %v1298_v18  }
  0x52   :  { %1076 = vset.pattern.permute.xlu1 %v1177_v3  ;;  %406 = vperm.xlu0 %1069, %v1312_v21  }
  0x53   :  { %182 = vperm.xlu1 %1076, %v1251_v9  }
  0x56   :  { %410 = vperm.xlu0 %1069, %v1326_v24  }
  0x57   :  { %1077 = vset.pattern.permute.xlu1 %v1178_v4 }
  0x58   :  { %278 = vperm.xlu1 %1077, %v48_v8  }
  0x5a   :  { %414 = vperm.xlu0 %1069, %v1339_v27  }
  0x5c   :  { %1078 = vset.pattern.permute.xlu1 %v1176_v0 }
  0x5d   :  { %93 = vperm.xlu1 %1078, %v1259_v10  }
  0x5e   :  { %1102 = vset.pattern.permute.xlu0 %v1178_v4 }
  0x5f   :  { %266 = vperm.xlu0 %1102, %v1220_v1  }
  0x61   :  { %1079 = vset.pattern.permute.xlu1 %v1177_v3 }
  0x62   :  { %186 = vperm.xlu1 %1079, %v1259_v10  }
  0x63   :  { %274 = vperm.xlu0 %1102, %v1240_v7  }
  0x66   :  { %1080 = vset.pattern.permute.xlu1 %v1176_v0 }
  0x67   :  { %98 = vperm.xlu1 %1080, %v1266_v11   ;;  %282 = vperm.xlu0 %1102, %v1251_v9  }
  0x6b   :  { %1081 = vset.pattern.permute.xlu1 %v1177_v3  ;;  %290 = vperm.xlu0 %1102, %v1266_v11  }
  0x6c   :  { %190 = vperm.xlu1 %1081, %v1266_v11  }
  0x6f   :  { %298 = vperm.xlu0 %1102, %v1285_v15  }
  0x70   :  { %1082 = vset.pattern.permute.xlu1 %v1178_v4 }
  0x71   :  { %286 = vperm.xlu1 %1082, %v1259_v10  }
  0x73   :  { %306 = vperm.xlu0 %1102, %v1312_v21  }
  0x75   :  { %1083 = vset.pattern.permute.xlu1 %v1176_v0 }
  0x76   :  { %103 = vperm.xlu1 %1083, %v1273_v12  }
  0x77   :  { %314 = vperm.xlu0 %1102, %v1339_v27  }
  0x7a   :  { %1084 = vset.pattern.permute.xlu1 %v1177_v3 }
  0x7b   :  { %194 = vperm.xlu1 %1084, %v1273_v12   ;;  %322 = vperm.xlu0 %1102, %v1383_v34  }
  0x7f   :  { %1085 = vset.pattern.permute.xlu1 %v1176_v0  ;;  %1105 = vset.pattern.permute.xlu0 %v1179_v5 }
  0x80   :  { %108 = vperm.xlu1 %1085, %v1285_v15  }
  0x84   :  { %1086 = vset.pattern.permute.xlu1 %v1177_v3 }
  0x85   :  { %198 = vperm.xlu1 %1086, %v1285_v15   ;;  %v58_v15 = vld [vmem:[%s1580_s0 + $0x70] sm:$0xff]  ;;  %s1180_s0 = smov [#allocation7]  }
  0x86   :  { %s864_s10 = sshll.u32 %s1180_s0, 4  ;;  %s865_s10 = int_to_ptr.vmem [resolvable:$true] %s864_s10 }
  0x87   :  { %s1146_s11 = scalar_lea.vmem %s865_s10, 2048  ;;  %p1151_p11 = scmp.lt.s32.totalorder %s865_s10, %s865_s10 }
  0x88   :  { %p1147_p10 = scmp.ne.s32.totalorder %s865_s10, %s1146_s11  ;;  %p1152_p12 = scmp.lt.s32.totalorder %s1146_s11, %s1146_s11 }
  0x89   :  { %1087 = vset.pattern.permute.xlu1 %v1178_v4 }
  0x8a   :  { %294 = vperm.xlu1 %1087, %v1273_v12   ;;  %p1153_p13 = por %p1152_p12, %p1151_p11 }
  0x8c   :  { %p1154_p0 = pnand %p1153_p13, %p1147_p10 }
  0x8e   :  { %1088 = vset.pattern.permute.xlu1 %v1176_v0 }
  0x8f   :  { %113 = vperm.xlu1 %1088, %v1298_v18  }
  0x93   :  { %1089 = vset.pattern.permute.xlu1 %v1177_v3 }
  0x94   :  { %202 = vperm.xlu1 %1089, %v1298_v18  }
  0x97   :  { %v1404_v39 = vpop.permute.xlu1 %68  ;;  %v64_v40 = vpop.permute.xlu0 %63 }
  0x98   :  { %1090 = vset.pattern.permute.xlu1 %v1176_v0  ;;  %v145_v46 = vmul.f32 %v1410_v42, %v64_v40 }
  0x99   :  { %118 = vperm.xlu1 %1090, %v1312_v21  }
  0x9c   :  { %v1418_v47 = vpop.permute.xlu1 %166  ;;  %v163_v48 = vpop.permute.xlu0 %162 }
  0x9d   :  { %1091 = vset.pattern.permute.xlu1 %v1177_v3  ;;  %v229_v49 = vmul.f32 %v1415_v45, %v163_v48 }
  0x9e   :  { %206 = vperm.xlu1 %1091, %v1312_v21  }
  0x9f   :  { %v245_v52 = vadd.f32 %v229_v49, %v145_v46 }
  0xa1   :  { %v263_v54 = vpop.permute.xlu1 %262  ;;  %v363_v55 = vpop.permute.xlu0 %362 }
  0xa2   :  { %v329_v56 = vmul.f32 %v1424_v50, %v263_v54  ;;  %1092 = vset.pattern.permute.xlu1 %v1178_v4  ;;  %v429_v57 = vmul.f32 %v1427_v51, %v363_v55 }
  0xa3   :  { %302 = vperm.xlu1 %1092, %v1298_v18  }
  0xa4   :  { %v345_v58 = vadd.f32 %v329_v56, %v245_v52 }
  0xa5   :  { %v1437_v60 = vpop.permute.xlu0 %366 }
  0xa6   :  { %v74_v61 = vpop.permute.xlu1 %73  ;;  %v445_v62 = vadd.f32 %v429_v57, %v345_v58  ;;  %v430_v44 = vmul.f32 %v1427_v51, %v1437_v60 }
  0xa7   :  { %1093 = vset.pattern.permute.xlu1 %v1176_v0 }
  0xa8   :  { %123 = vperm.xlu1 %1093, %v1326_v24   ;;  %v465_v63 = vadd.f32 %v1435_v59, %v445_v62 }
  0xa9   :  { %v371_v1 = vpop.permute.xlu0 %370 }
  0xaa   :  { %v481_v2 = vmax.f32 %v465_v63, 0.0  ;;  %v431_v31 = vmul.f32 %v1427_v51, %v371_v1 }
  0xab   :  { %v171_v6 = vpop.permute.xlu1 %170 }
  0xac   :  { %1094 = vset.pattern.permute.xlu1 %v1177_v3  ;;  %973 = vmatprep.mubr.f32.mxu0 %v481_v2  ;;  %v231_v25 = vmul.f32 %v1415_v45, %v171_v6 }
  0xad   :  { %210 = vperm.xlu1 %1094, %v1326_v24   ;;  %v375_v7 = vpop.permute.xlu0 %374 }
  0xb0   :  { %v79_v8 = vpop.permute.xlu1 %78 }
  0xb1   :  { %1095 = vset.pattern.permute.xlu1 %v1176_v0  ;;  %v379_v9 = vpop.permute.xlu0 %378  ;;  %v148_v53 = vmul.f32 %v1410_v42, %v79_v8  ;;  %v693_v8 = vld [vmem:[#allocation5 + $0x78] sm:$0xff] }
  0xb2   :  { %128 = vperm.xlu1 %1095, %v1339_v27   ;;  %v433_v48 = vmul.f32 %v1427_v51, %v379_v9  ;;  %v692_v9 = vld [vmem:[#allocation5 + $0x70] sm:$0xff]  ;;  %997 = vmatprep.subr.mxu1 %v693_v8 }
  0xb3   :  { %998 = vmatpush3.msra.mxu1 %v693_v8 }
  0xb4   :  { %999 = vmatprep.subr.mxu1 %v692_v9 }
  0xb5   :  { %v175_v10 = vpop.permute.xlu1 %174  ;;  %v1446_v11 = vpop.permute.xlu0 %382  ;;  %1000 = vmatpush3.msra.mxu1 %v692_v9 }
  0xb6   :  { %1096 = vset.pattern.permute.xlu1 %v1177_v3  ;;  %v232_v46 = vmul.f32 %v1415_v45, %v175_v10  ;;  %v434_v6 = vmul.f32 %v1427_v51, %v1446_v11 }
  0xb7   :  { %214 = vperm.xlu1 %1096, %v1339_v27   ;;  %v147_v27 = vmul.f32 %v1410_v42, %v74_v61 }
  0xb8   :  { %v248_v56 = vadd.f32 %v232_v46, %v148_v53 }
  0xb9   :  { %v1450_v12 = vpop.permute.xlu0 %386  ;;  %v247_v29 = vadd.f32 %v231_v25, %v147_v27  ;;  %v690_v27 = vld [vmem:[#allocation5 + $0x60] sm:$0xff] }
  0xba   :  { %v271_v13 = vpop.permute.xlu1 %270  ;;  %v435_v53 = vmul.f32 %v1427_v51, %v1450_v12 }
  0xbb   :  { %1097 = vset.pattern.permute.xlu1 %v1178_v4  ;;  %v331_v28 = vmul.f32 %v1424_v50, %v271_v13 }
  0xbc   :  { %310 = vperm.xlu1 %1097, %v1326_v24  }
  0xbd   :  { %v1454_v14 = vpop.permute.xlu0 %390  ;;  %v347_v32 = vadd.f32 %v331_v28, %v247_v29 }
  0xbf   :  { %v84_v16 = vpop.permute.xlu1 %83  ;;  %v447_v49 = vadd.f32 %v431_v31, %v347_v32 }
  0xc0   :  { %1098 = vset.pattern.permute.xlu1 %v1176_v0  ;;  %v149_v33 = vmul.f32 %v1410_v42, %v84_v16 }
  0xc1   :  { %133 = vperm.xlu1 %1098, %v58_v15   ;;  %v1460_v17 = vpop.permute.xlu0 %394  ;;  %v467_v62 = vadd.f32 %v1435_v59, %v447_v49 }
  0xc4   :  { %v179_v18 = vpop.permute.xlu1 %178 }
  0xc5   :  { %1099 = vset.pattern.permute.xlu1 %v1177_v3  ;;  %v1463_v19 = vpop.permute.xlu0 %398  ;;  %v233_v30 = vmul.f32 %v1415_v45, %v179_v18  ;;  %v483_v18 = vmax.f32 %v467_v62, 0.0 }
  0xc6   :  { %218 = vperm.xlu1 %1099, %v58_v15  }
  0xc7   :  { %v249_v40 = vadd.f32 %v233_v30, %v149_v33 }
  0xc9   :  { %v89_v20 = vpop.permute.xlu1 %88  ;;  %v1465_v21 = vpop.permute.xlu0 %402 }
  0xca   :  { %1100 = vset.pattern.permute.xlu1 %v1176_v0  ;;  %v150_v63 = vmul.f32 %v1410_v42, %v89_v20  ;;  %v691_v20 = vld [vmem:[#allocation5 + $0x68] sm:$0xff] }
  0xcb   :  { %138 = vperm.xlu1 %1100, %v1383_v34   ;;  %1001 = vmatprep.subr.mxu1 %v691_v20 }
  0xcc   :  { %1002 = vmatpush3.msra.mxu1 %v691_v20 }
  0xcd   :  { %v1469_v22 = vpop.permute.xlu0 %406  ;;  %1003 = vmatprep.subr.mxu1 %v690_v27 }
  0xce   :  { %v183_v23 = vpop.permute.xlu1 %182  ;;  %1004 = vmatpush3.msra.mxu1 %v690_v27  ;;  %v437_v27 = vmul.f32 %v1427_v51, %v1460_v17 }
  0xcf   :  { %1101 = vset.pattern.permute.xlu1 %v1177_v3  ;;  %v230_v3 = vmul.f32 %v1415_v45, %v1418_v47  ;;  %v234_v57 = vmul.f32 %v1415_v45, %v183_v23 }
  0xd0   :  { %222 = vperm.xlu1 %1101, %v1383_v34  }
  0xd1   :  { %v1473_v24 = vpop.permute.xlu0 %410  ;;  %v250_v10 = vadd.f32 %v234_v57, %v150_v63 }
  0xd3   :  { %v279_v26 = vpop.permute.xlu1 %278 }
  0xd4   :  { %1103 = vset.pattern.permute.xlu1 %v1178_v4  ;;  %v333_v35 = vmul.f32 %v1424_v50, %v279_v26  ;;  %v146_v4 = vmul.f32 %v1410_v42, %v1404_v39 }
  0xd5   :  { %318 = vperm.xlu1 %1103, %v58_v15   ;;  %v1479_v0 = vpop.permute.xlu0 %414 }
  0xd6   :  { %v246_v43 = vadd.f32 %v230_v3, %v146_v4  ;;  %v349_v52 = vadd.f32 %v333_v35, %v249_v40  ;;  %v689_v35 = vld [vmem:[#allocation5 + $0x58] sm:$0xff] }
  0xd7   :  { %1005 = vmatprep.subr.mxu1 %v689_v35 }
  0xd8   :  { %v1487_v37 = vpop.permute.xlu1 %93  ;;  %v449_v61 = vadd.f32 %v433_v48, %v349_v52  ;;  %1006 = vmatpush3.msra.mxu1 %v689_v35  ;;  %v687_v52 = vld [vmem:[#allocation5 + $0x48] sm:$0xff] }
  0xd9   :  { %1104 = vset.pattern.permute.xlu1 %v1179_v5  ;;  %v432_v5 = vmul.f32 %v1427_v51, %v375_v7  ;;  %v151_v46 = vmul.f32 %v1410_v42, %v1487_v37  ;;  %v685_v37 = vld [vmem:[#allocation5 + $0x38] sm:$0xff] }
  0xda   :  { %418 = vperm.xlu1 %1104, %v58_v15   ;;  %v267_v41 = vpop.permute.xlu0 %266  ;;  %v469_v23 = vadd.f32 %v1435_v59, %v449_v61  ;;  %v683_v61 = vld [vmem:[#allocation5 + $0x28] sm:$0xff] }
  0xdb   :  { %v330_v47 = vmul.f32 %v1424_v50, %v267_v41  ;;  %v436_v41 = vmul.f32 %v1427_v51, %v1454_v14 }
  0xdc   :  { %v485_v33 = vmax.f32 %v469_v23, 0.0 }
  0xdd   :  { %v346_v39 = vadd.f32 %v330_v47, %v246_v43  ;;  %v187_v54 = vpop.permute.xlu1 %186 }
  0xde   :  { %422 = vperm.xlu1 %1104, %v1383_v34   ;;  %v275_v55 = vpop.permute.xlu0 %274  ;;  %v235_v4 = vmul.f32 %v1415_v45, %v187_v54 }
  0xdf   :  { %v446_v58 = vadd.f32 %v430_v44, %v346_v39  ;;  %v332_v60 = vmul.f32 %v1424_v50, %v275_v55  ;;  %v688_v44 = vld [vmem:[#allocation5 + $0x50] sm:$0xff] }
  0xe0   :  { %v251_v39 = vadd.f32 %v235_v4, %v151_v46  ;;  %1007 = vmatprep.subr.mxu1 %v688_v44 }
  0xe1   :  { %v348_v1 = vadd.f32 %v332_v60, %v248_v56  ;;  %v466_v2 = vadd.f32 %v1435_v59, %v446_v58  ;;  %1008 = vmatpush3.msra.mxu1 %v688_v44  ;;  %v684_v60 = vld [vmem:[#allocation5 + $0x30] sm:$0xff] }
  0xe2   :  { %v99_v7 = vpop.permute.xlu1 %98  ;;  %v283_v34 = vpop.permute.xlu0 %282  ;;  %1009 = vmatprep.subr.mxu1 %v687_v52 }
  0xe3   :  { %v448_v13 = vadd.f32 %v432_v5, %v348_v1  ;;  %v334_v15 = vmul.f32 %v1424_v50, %v283_v34  ;;  %v482_v16 = vmax.f32 %v466_v2, 0.0  ;;  %v152_v3 = vmul.f32 %v1410_v42, %v99_v7  ;;  %v686_v5 = vld [vmem:[#allocation5 + $0x40] sm:$0xff]  ;;  %1010 = vmatpush3.msra.mxu1 %v687_v52 }
  0xe4   :  { %1011 = vmatprep.subr.mxu1 %v686_v5  ;;  %v682_v2 = vld [vmem:[#allocation5 + $0x20] sm:$0xff] }
  0xe5   :  { %v350_v25 = vadd.f32 %v334_v15, %v250_v10  ;;  %974 = vmatmul.mubr.f32.vlgmr.msra.gmra.mxu0 %v482_v16  ;;  %v468_v26 = vadd.f32 %v1435_v59, %v448_v13  ;;  %1012 = vmatpush3.msra.mxu1 %v686_v5 }
  0xe6   :  { %976 = vmatprep.mubr.f32.mxu0 %v483_v18  ;;  %v291_v11 = vpop.permute.xlu0 %290  ;;  %1013 = vmatprep.subr.mxu1 %v685_v37  ;;  %v438_v18 = vmul.f32 %v1427_v51, %v1463_v19 }
  0xe7   :  { %v450_v28 = vadd.f32 %v434_v6, %v350_v25  ;;  %v191_v29 = vpop.permute.xlu1 %190  ;;  %v484_v30 = vmax.f32 %v468_v26, 0.0  ;;  %v336_v32 = vmul.f32 %v1424_v50, %v291_v11  ;;  %1014 = vmatpush3.msra.mxu1 %v685_v37 }
  0xe8   :  { %v236_v31 = vmul.f32 %v1415_v45, %v191_v29  ;;  %1015 = vmatprep.subr.mxu1 %v684_v60 }
  0xe9   :  { %977 = vmatmul.mubr.f32.gmra.mxu0 %v484_v30  ;;  %v470_v40 = vadd.f32 %v1435_v59, %v450_v28  ;;  %1016 = vmatpush3.msra.mxu1 %v684_v60 }
  0xea   :  { %v252_v43 = vadd.f32 %v236_v31, %v152_v3  ;;  %979 = vmatprep.mubr.f32.mxu0 %v485_v33  ;;  %1017 = vmatprep.subr.mxu1 %v683_v61  ;;  %v299_v7 = vpop.permute.xlu0 %298 }
  0xeb   :  { %v486_v47 = vmax.f32 %v470_v40, 0.0  ;;  %1018 = vmatpush3.msra.mxu1 %v683_v61  ;;  %v338_v10 = vmul.f32 %v1424_v50, %v299_v7 }
  0xec   :  { %v352_v48 = vadd.f32 %v336_v32, %v252_v43  ;;  %v287_v49 = vpop.permute.xlu1 %286  ;;  %1019 = vmatprep.subr.mxu1 %v682_v2 }
  0xed   :  { %v335_v54 = vmul.f32 %v1424_v50, %v287_v49  ;;  %980 = vmatmul.mubr.f32.gmra.mxu0 %v486_v47  ;;  %1020 = vmatpush3.msra.mxu1 %v682_v2 }
  0xee   :  { %v452_v14 = vadd.f32 %v436_v41, %v352_v48  ;;  %v307_v4 = vpop.permute.xlu0 %306  ;;  %v440_v48 = vmul.f32 %v1427_v51, %v1469_v22  ;;  %v680_v22 = vld [vmem:[#allocation5 + $0x10] sm:$0xff] }
  0xef   :  { %v351_v55 = vadd.f32 %v335_v54, %v251_v39  ;;  %v340_v17 = vmul.f32 %v1424_v50, %v307_v4 }
  0xf0   :  { %v472_v58 = vadd.f32 %v1435_v59, %v452_v14  ;;  %v439_v14 = vmul.f32 %v1427_v51, %v1465_v21  ;;  %v678_v21 = vld [vmem:[#allocation5] sm:$0xff] }
  0xf1   :  { %v451_v56 = vadd.f32 %v435_v53, %v351_v55  ;;  %v104_v57 = vpop.permute.xlu1 %103 }
  0xf2   :  { %v488_v1 = vmax.f32 %v472_v58, 0.0  ;;  %v153_v16 = vmul.f32 %v1410_v42, %v104_v57  ;;  %v681_v57 = vld [vmem:[#allocation5 + $0x18] sm:$0xff] }
  0xf3   :  { %v471_v12 = vadd.f32 %v1435_v59, %v451_v56  ;;  %1021 = vmatprep.subr.mxu1 %v681_v57 }
  0xf4   :  { %1022 = vmatpush3.msra.mxu1 %v681_v57 }
  0xf5   :  { %v487_v62 = vmax.f32 %v471_v12, 0.0  ;;  %1023 = vmatprep.subr.mxu1 %v680_v22 }
  0xf6   :  { %v195_v63 = vpop.permute.xlu1 %194  ;;  %1024 = vmatpush3.msra.mxu1 %v680_v22 }
  0xf7   :  { %982 = vmatprep.mubr.f32.mxu0 %v487_v62  ;;  %v237_v13 = vmul.f32 %v1415_v45, %v195_v63  ;;  %v679_v62 = vld [vmem:[#allocation5 + $0x8] sm:$0xff] }
  0xf8   :  { %983 = vmatmul.mubr.f32.gmra.mxu0 %v488_v1  ;;  %1025 = vmatprep.subr.mxu1 %v679_v62  ;;  %v315_v1 = vpop.permute.xlu0 %314 }
  0xf9   :  { %v253_v25 = vadd.f32 %v237_v13, %v153_v16  ;;  %1026 = vmatpush3.msra.mxu1 %v679_v62  ;;  %v442_v13 = vmul.f32 %v1427_v51, %v1479_v0 }
  0xfa   :  { %1027 = vmatprep.subr.mxu1 %v678_v21 }
  0xfb   :  { %v109_v6 = vpop.permute.xlu1 %108  ;;  %1028 = vmatpush3.msra.mxu1 %v678_v21 }
  0xfc   :  { %v154_v8 = vmul.f32 %v1410_v42, %v109_v6 }
 0x100   :  { %v199_v34 = vpop.permute.xlu1 %198 }
 0x101   :  { %v238_v9 = vmul.f32 %v1415_v45, %v199_v34  ;;  %v342_v34 = vmul.f32 %v1424_v50, %v315_v1 }
 0x103   :  { %v254_v15 = vadd.f32 %v238_v9, %v154_v8 }
 0x105   :  { %v354_v23 = vadd.f32 %v338_v10, %v254_v15  ;;  %v295_v20 = vpop.permute.xlu1 %294 }
 0x106   :  { %v337_v26 = vmul.f32 %v1424_v50, %v295_v20 }
 0x107   :  { %v454_v11 = vadd.f32 %v438_v18, %v354_v23 }
 0x108   :  { %v353_v28 = vadd.f32 %v337_v26, %v253_v25  ;;  %v441_v25 = vmul.f32 %v1427_v51, %v1473_v24 }
 0x109   :  { %v474_v3 = vadd.f32 %v1435_v59, %v454_v11 }
 0x10a   :  { %v453_v29 = vadd.f32 %v437_v27, %v353_v28  ;;  %v114_v30 = vpop.permute.xlu1 %113 }
 0x10b   :  { %v490_v35 = vmax.f32 %v474_v3, 0.0  ;;  %v155_v47 = vmul.f32 %v1410_v42, %v114_v30 }
 0x10c   :  { %v473_v31 = vadd.f32 %v1435_v59, %v453_v29 }
 0x10e   :  { %v489_v32 = vmax.f32 %v473_v31, 0.0 }
 0x10f   :  { %v203_v33 = vpop.permute.xlu1 %202 }
 0x110   :  { %985 = vmatprep.mubr.f32.mxu0 %v489_v32  ;;  %v239_v44 = vmul.f32 %v1415_v45, %v203_v33 }
 0x111   :  { %986 = vmatmul.mubr.f32.gmra.mxu0 %v490_v35 }
 0x112   :  { %v255_v53 = vadd.f32 %v239_v44, %v155_v47 }
 0x114   :  { %v119_v19 = vpop.permute.xlu1 %118 }
 0x115   :  { %v156_v41 = vmul.f32 %v1410_v42, %v119_v19 }
 0x119   :  { %v207_v40 = vpop.permute.xlu1 %206 }
 0x11a   :  { %v240_v43 = vmul.f32 %v1415_v45, %v207_v40 }
 0x11c   :  { %v256_v46 = vadd.f32 %v240_v43, %v156_v41  ;;  %v323_v43 = vpop.permute.xlu0 %322 }
 0x11e   :  { %v356_v49 = vadd.f32 %v340_v17, %v256_v46  ;;  %v303_v52 = vpop.permute.xlu1 %302 }
 0x11f   :  { %v339_v39 = vmul.f32 %v1424_v50, %v303_v52 }
 0x120   :  { %v456_v54 = vadd.f32 %v440_v48, %v356_v49  ;;  %v344_v48 = vmul.f32 %v1424_v50, %v323_v43 }
 0x121   :  { %v355_v5 = vadd.f32 %v339_v39, %v255_v53 }
 0x122   :  { %v476_v56 = vadd.f32 %v1435_v59, %v456_v54 }
 0x123   :  { %v455_v55 = vadd.f32 %v439_v14, %v355_v5  ;;  %v124_v37 = vpop.permute.xlu1 %123 }
 0x124   :  { %v492_v61 = vmax.f32 %v476_v56, 0.0  ;;  %v157_v10 = vmul.f32 %v1410_v42, %v124_v37 }
 0x125   :  { %v475_v58 = vadd.f32 %v1435_v59, %v455_v55  ;;  %v515_v55 = vsub.s32 5, %v1397_v36 }
 0x127   :  { %v491_v60 = vmax.f32 %v475_v58, 0.0  ;;  %v516_v37 = vrot.slane %v1402_v38, %v515_v55 }
 0x128   :  { %v211_v12 = vpop.permute.xlu1 %210 }
 0x129   :  { %988 = vmatprep.mubr.f32.mxu0 %v491_v60  ;;  %v241_v8 = vmul.f32 %v1415_v45, %v211_v12 }
 0x12a   :  { %989 = vmatmul.mubr.f32.gmra.mxu0 %v492_v61 }
 0x12b   :  { %v257_v18 = vadd.f32 %v241_v8, %v157_v10 }
 0x12d   :  { %v129_v63 = vpop.permute.xlu1 %128 }
 0x12e   :  { %v158_v6 = vmul.f32 %v1410_v42, %v129_v63 }
 0x132   :  { %v215_v2 = vpop.permute.xlu1 %214 }
 0x133   :  { %v242_v7 = vmul.f32 %v1415_v45, %v215_v2 }
 0x135   :  { %v258_v9 = vadd.f32 %v242_v7, %v158_v6 }
 0x137   :  { %v358_v15 = vadd.f32 %v342_v34, %v258_v9  ;;  %v311_v16 = vpop.permute.xlu1 %310 }
 0x138   :  { %v341_v23 = vmul.f32 %v1424_v50, %v311_v16 }
 0x139   :  { %v458_v20 = vadd.f32 %v442_v13, %v358_v15 }
 0x13a   :  { %v357_v26 = vadd.f32 %v341_v23, %v257_v18 }
 0x13b   :  { %v478_v28 = vadd.f32 %v1435_v59, %v458_v20 }
 0x13c   :  { %v457_v11 = vadd.f32 %v441_v25, %v357_v26  ;;  %v134_v27 = vpop.permute.xlu1 %133 }
 0x13d   :  { %v494_v31 = vmax.f32 %v478_v28, 0.0  ;;  %v159_v19 = vmul.f32 %v1410_v42, %v134_v27 }
 0x13e   :  { %v477_v29 = vadd.f32 %v1435_v59, %v457_v11 }
 0x140   :  { %v493_v30 = vmax.f32 %v477_v29, 0.0 }
 0x141   :  { %v219_v3 = vpop.permute.xlu1 %218 }
 0x142   :  { %991 = vmatprep.mubr.f32.mxu0 %v493_v30  ;;  %v243_v33 = vmul.f32 %v1415_v45, %v219_v3 }
 0x143   :  { %992 = vmatmul.mubr.f32.gmra.mxu0 %v494_v31 }
 0x144   :  { %v259_v40 = vadd.f32 %v243_v33, %v159_v19 }
 0x146   :  { %v139_v0 = vpop.permute.xlu1 %138 }
 0x147   :  { %v160_v41 = vmul.f32 %v1410_v42, %v139_v0 }
 0x14b   :  { %v223_v32 = vpop.permute.xlu1 %222 }
 0x14c   :  { %v244_v24 = vmul.f32 %v1415_v45, %v223_v32 }
 0x14e   :  { %v260_v44 = vadd.f32 %v244_v24, %v160_v41 }
 0x150   :  { %v319_v35 = vpop.permute.xlu1 %318  ;;  %v360_v53 = vadd.f32 %v344_v48, %v260_v44 }
 0x151   :  { %v343_v4 = vmul.f32 %v1424_v50, %v319_v35 }
 0x153   :  { %v359_v46 = vadd.f32 %v343_v4, %v259_v40 }
 0x155   :  { %v419_v17 = vpop.permute.xlu1 %418 }
 0x156   :  { %v443_v47 = vmul.f32 %v1427_v51, %v419_v17 }
 0x158   :  { %v459_v49 = vadd.f32 %v443_v47, %v359_v46  ;;  %v696_v46 = vsub.s32 6, %v1397_v36 }
 0x159   :  { %v423_v52 = vpop.permute.xlu1 %422 }
 0x15a   :  { %v444_v39 = vmul.f32 %v1427_v51, %v423_v52  ;;  %v479_v45 = vadd.f32 %v1435_v59, %v459_v49  ;;  %v697_v47 = vrot.slane %v1402_v38, %v696_v46 }
 0x15c   :  { %v460_v54 = vadd.f32 %v444_v39, %v360_v53  ;;  %v495_v14 = vmax.f32 %v479_v45, 0.0 }
 0x15e   :  { %994 = vmatprep.mubr.f32.mxu0 %v495_v14  ;;  %v480_v42 = vadd.f32 %v1435_v59, %v460_v54 }
 0x160   :  { %v496_v5 = vmax.f32 %v480_v42, 0.0 }
 0x162   :  { %995 = vmatmul.mubr.f32.gmra.mxu0 %v496_v5 }
 0x1a5   :  { %v975_v56 = vpop.f32.mrf.mxu0 }
 0x1a6   :  { %v589_v50 = vadd.f32 %v975_v56, %v516_v37 }
 0x1a7   :  { %v583_v57 = vpop.f32.mrf.mxu0 }
 0x1a8   :  { %v584_v58 = vadd.f32 %v583_v57, %v516_v37  ;;  %v663_v51 = vmax.f32 %v589_v50, 0.0 }
 0x1a9   :  { %v978_v22 = vpop.f32.mrf.mxu0 }
 0x1aa   :  { %v662_v60 = vmax.f32 %v584_v58, 0.0  ;;  %v599_v12 = vadd.f32 %v978_v22, %v516_v37 }
 0x1ab   :  { %v593_v61 = vpop.f32.mrf.mxu0 }
 0x1ac   :  { %v594_v62 = vadd.f32 %v593_v61, %v516_v37  ;;  %1029 = vmatprep.mubr.f32.mxu1 %v662_v60  ;;  %v665_v63 = vmax.f32 %v599_v12, 0.0 }
 0x1ad   :  { %v981_v21 = vpop.f32.mrf.mxu0  ;;  %1030 = vmatmul.mubr.f32.vlgmr.msra.gmra.mxu1 %v663_v51 }
 0x1ae   :  { %v664_v59 = vmax.f32 %v594_v62, 0.0  ;;  %v609_v1 = vadd.f32 %v981_v21, %v516_v37 }
 0x1af   :  { %v603_v2 = vpop.f32.mrf.mxu0 }
 0x1b0   :  { %v604_v6 = vadd.f32 %v603_v2, %v516_v37  ;;  %1032 = vmatprep.mubr.f32.mxu1 %v664_v59  ;;  %v667_v34 = vmax.f32 %v609_v1, 0.0 }
 0x1b1   :  { %1033 = vmatmul.mubr.f32.gmra.mxu1 %v665_v63 }
 0x1b2   :  { %v666_v7 = vmax.f32 %v604_v6, 0.0 }
 0x1b4   :  { %1035 = vmatprep.mubr.f32.mxu1 %v666_v7 }
 0x1b5   :  { %1036 = vmatmul.mubr.f32.gmra.mxu1 %v667_v34 }
 0x1b8   :  { %v984_v8 = vpop.f32.mrf.mxu0 }
 0x1b9   :  { %v619_v9 = vadd.f32 %v984_v8, %v516_v37 }
 0x1ba   :  { %v613_v10 = vpop.f32.mrf.mxu0 }
 0x1bb   :  { %v614_v13 = vadd.f32 %v613_v10, %v516_v37  ;;  %v669_v16 = vmax.f32 %v619_v9, 0.0 }
 0x1bd   :  { %v668_v15 = vmax.f32 %v614_v13, 0.0 }
 0x1bf   :  { %1038 = vmatprep.mubr.f32.mxu1 %v668_v15 }
 0x1c0   :  { %1039 = vmatmul.mubr.f32.gmra.mxu1 %v669_v16 }
 0x1d1   :  { %v987_v18 = vpop.f32.mrf.mxu0 }
 0x1d2   :  { %v629_v23 = vadd.f32 %v987_v18, %v516_v37 }
 0x1d3   :  { %v623_v20 = vpop.f32.mrf.mxu0 }
 0x1d4   :  { %v624_v25 = vadd.f32 %v623_v20, %v516_v37  ;;  %v671_v11 = vmax.f32 %v629_v23, 0.0 }
 0x1d6   :  { %v670_v26 = vmax.f32 %v624_v25, 0.0 }
 0x1d8   :  { %1041 = vmatprep.mubr.f32.mxu1 %v670_v26 }
 0x1d9   :  { %1042 = vmatmul.mubr.f32.gmra.mxu1 %v671_v11 }
 0x1ea   :  { %v990_v27 = vpop.f32.mrf.mxu0 }
 0x1eb   :  { %v639_v28 = vadd.f32 %v990_v27, %v516_v37 }
 0x1ec   :  { %v633_v29 = vpop.f32.mrf.mxu0 }
 0x1ed   :  { %v634_v30 = vadd.f32 %v633_v29, %v516_v37  ;;  %v673_v31 = vmax.f32 %v639_v28, 0.0 }
 0x1ef   :  { %v672_v3 = vmax.f32 %v634_v30, 0.0 }
 0x1f1   :  { %1044 = vmatprep.mubr.f32.mxu1 %v672_v3 }
 0x1f2   :  { %1045 = vmatmul.mubr.f32.gmra.mxu1 %v673_v31 }
 0x203   :  { %v993_v0 = vpop.f32.mrf.mxu0 }
 0x204   :  { %v649_v32 = vadd.f32 %v993_v0, %v516_v37 }
 0x205   :  { %v643_v33 = vpop.f32.mrf.mxu0 }
 0x206   :  { %v644_v35 = vadd.f32 %v643_v33, %v516_v37  ;;  %v675_v24 = vmax.f32 %v649_v32, 0.0 }
 0x208   :  { %v674_v19 = vmax.f32 %v644_v35, 0.0 }
 0x20a   :  { %1047 = vmatprep.mubr.f32.mxu1 %v674_v19 }
 0x20b   :  { %1048 = vmatmul.mubr.f32.gmra.mxu1 %v675_v24 }
 0x222   :  { %v996_v4 = vpop.f32.mrf.mxu0 }
 0x223   :  { %v659_v40 = vadd.f32 %v996_v4, %v516_v37 }
 0x224   :  { %v653_v41 = vpop.f32.mrf.mxu0 }
 0x225   :  { %v654_v43 = vadd.f32 %v653_v41, %v516_v37  ;;  %v677_v44 = vmax.f32 %v659_v40, 0.0 }
 0x227   :  { %v676_v17 = vmax.f32 %v654_v43, 0.0 }
 0x229   :  { %1050 = vmatprep.mubr.f32.mxu1 %v676_v17 }
 0x22a   :  { %1051 = vmatmul.mubr.f32.gmra.mxu1 %v677_v44 }
 0x26d   :  { %v1031_v48 = vpop.f32.mrf.mxu1 }
 0x26e   :  { %v770_v49 = vadd.f32 %v1031_v48, %v697_v47 }
 0x26f   :  { %v764_v52 = vpop.f32.mrf.mxu1 }
 0x270   :  { %844 = vst [vmem:[#allocation7 + $0x8] sm:$0xff] %v770_v49  ;;  %v765_v53 = vadd.f32 %v764_v52, %v697_v47 }
 0x271   :  { %v1034_v39 = vpop.f32.mrf.mxu1 }
 0x272   :  { %843 = vst [vmem:[#allocation7] sm:$0xff] %v765_v53  ;;  %v780_v45 = vadd.f32 %v1034_v39, %v697_v47 }
 0x273   :  { %v774_v54 = vpop.f32.mrf.mxu1 }
 0x274   :  { %846 = vst [vmem:[#allocation7 + $0x18] sm:$0xff] %v780_v45  ;;  %v775_v14 = vadd.f32 %v774_v54, %v697_v47 }
 0x275   :  { %v1037_v42 = vpop.f32.mrf.mxu1 }
 0x276   :  { %845 = vst [vmem:[#allocation7 + $0x10] sm:$0xff] %v775_v14  ;;  %v790_v5 = vadd.f32 %v1037_v42, %v697_v47 }
 0x277   :  { %v784_v55 = vpop.f32.mrf.mxu1 }
 0x278   :  { %848 = vst [vmem:[#allocation7 + $0x28] sm:$0xff] %v790_v5  ;;  %v785_v37 = vadd.f32 %v784_v55, %v697_v47 }
 0x27a   :  { %847 = vst [vmem:[#allocation7 + $0x20] sm:$0xff] %v785_v37 }
 0x280   :  { %v1040_v36 = vpop.f32.mrf.mxu1 }
 0x281   :  { %v800_v38 = vadd.f32 %v1040_v36, %v697_v47 }
 0x282   :  { %v794_v56 = vpop.f32.mrf.mxu1 }
 0x283   :  { %850 = vst [vmem:[#allocation7 + $0x38] sm:$0xff] %v800_v38  ;;  %v795_v50 = vadd.f32 %v794_v56, %v697_v47 }
 0x285   :  { %849 = vst [vmem:[#allocation7 + $0x30] sm:$0xff] %v795_v50 }
 0x299   :  { %v1043_v57 = vpop.f32.mrf.mxu1 }
 0x29a   :  { %v810_v58 = vadd.f32 %v1043_v57, %v697_v47 }
 0x29b   :  { %v804_v22 = vpop.f32.mrf.mxu1 }
 0x29c   :  { %852 = vst [vmem:[#allocation7 + $0x48] sm:$0xff] %v810_v58  ;;  %v805_v60 = vadd.f32 %v804_v22, %v697_v47 }
 0x29e   :  { %851 = vst [vmem:[#allocation7 + $0x40] sm:$0xff] %v805_v60 }
 0x2b2   :  { %v1046_v51 = vpop.f32.mrf.mxu1 }
 0x2b3   :  { %v820_v12 = vadd.f32 %v1046_v51, %v697_v47 }
 0x2b4   :  { %v814_v61 = vpop.f32.mrf.mxu1 }
 0x2b5   :  { %854 = vst [vmem:[#allocation7 + $0x58] sm:$0xff] %v820_v12  ;;  %v815_v62 = vadd.f32 %v814_v61, %v697_v47 }
 0x2b7   :  { %853 = vst [vmem:[#allocation7 + $0x50] sm:$0xff] %v815_v62 }
 0x2cb   :  { %v1049_v21 = vpop.f32.mrf.mxu1 }
 0x2cc   :  { %v830_v59 = vadd.f32 %v1049_v21, %v697_v47 }
 0x2cd   :  { %v824_v63 = vpop.f32.mrf.mxu1 }
 0x2ce   :  { %856 = vst [vmem:[#allocation7 + $0x68] sm:$0xff] %v830_v59  ;;  %v825_v1 = vadd.f32 %v824_v63, %v697_v47 }
 0x2d0   :  { %855 = vst [vmem:[#allocation7 + $0x60] sm:$0xff] %v825_v1 }
 0x2ea   :  { %v1052_v2 = vpop.f32.mrf.mxu1 }
 0x2eb   :  { %v840_v6 = vadd.f32 %v1052_v2, %v697_v47 }
 0x2ec   :  { %v834_v7 = vpop.f32.mrf.mxu1 }
 0x2ed   :  { %858 = vst [vmem:[#allocation7 + $0x78] sm:$0xff] %v840_v6  ;;  %v835_v34 = vadd.f32 %v834_v7, %v697_v47 }
 0x2ef   :  { %857 = vst [vmem:[#allocation7 + $0x70] sm:$0xff] %v835_v34 }
 0x2f0   :  { %1157 = shalt.err (!%p1154_p0)
}
 0x2f1   :  { %870 = dma.vmem_to_hbm [thread:$0]  %s865_s10, 2048, %s1584_s4, [#allocation4], %s1174_s23, %s1174_s23, %s1175_s24  }
 0x2f2   :  { %1170 = dma.done.wait [#allocation4], 2048  }
 0x2f3   :  { %1171 = vsyncadd [#allocation4], 4294965248 }
 0x2f4   :  { %874 = vsyncpa [#allocation3], 1 }
 0x2f5   :  { %875 = vsyncpa [#allocation6], 1 }
 0x2f6   :  { %876 = vsyncpa [#allocation4], 1 }

</bundles_post_ra>
